<compile_context>
chip_gen: v5e
topology: v5e:2x2
jax: 0.10.0
libtpu: 0.0.40
codegen_flags: <defaults>
</compile_context>

<pallas_src>
import jax
import jax.numpy as jnp
from jax.experimental import pallas as pl
from jax.experimental.pallas import tpu as pltpu

_LANES = 128
_DEFAULT_BLOCK_ROWS = 2048  # 1 MiB f32 tile per input; good on v5e/v6e/v7x.


def _elbo_kernel(out_ref, gt_ref, kl_in_ref,        # inputs
                 tot_ref, rc_ref, kl_ref,           # outputs (SMEM scalars)
                 acc_ref, kl_sc):                   # scratch
    i = pl.program_id(0)

    @pl.when(i == 0)
    def _init():
        # Zero the per-lane accumulator and compute the KL term exactly once.
        acc_ref[...] = jnp.zeros_like(acc_ref)
        mu = kl_in_ref[0]
        ls = kl_in_ref[1]
        kl_sc[0] = -0.5 * jnp.sum(1.0 + ls - mu * mu - jnp.exp(ls))

    # Hot loop: pure VPU elementwise work, no cross-lane reduce per step.
    d = out_ref[...] - gt_ref[...]
    acc_ref[...] += d * d

    @pl.when(i == pl.num_programs(0) - 1)
    def _finalize():
        rc = jnp.sum(acc_ref[...])      # single XLU reduce, out of the hot loop
        kl = kl_sc[0]
        rc_ref[0, 0] = rc
        kl_ref[0, 0] = kl
        tot_ref[0, 0] = rc + kl


def _round_up(x, m):
    return ((x + m - 1) // m) * m


def elbo(mu, logsig, output, gt, *, block_rows=_DEFAULT_BLOCK_ROWS):
    """Returns (rcloss + kldiv, rcloss, kldiv), matching ELBO.forward."""
    # ---- output / gt: flatten, view as (rows_total, 128) with minimal padding.
    out_flat = jnp.asarray(output, jnp.float32).reshape(-1)
    gt_flat = jnp.asarray(gt, jnp.float32).reshape(-1)
    n = out_flat.shape[0]

    rows = max(8, _round_up(pl.cdiv(n, _LANES), 8))
    blk = min(_round_up(block_rows, 8), rows)        # multiple of 8 sublanes
    nblk = pl.cdiv(rows, blk)
    rows_total = nblk * blk
    total = rows_total * _LANES
    if total != n:
        # Only materialize a padded copy for ragged element counts.
        out_flat = jnp.pad(out_flat, (0, total - n))
        gt_flat = jnp.pad(gt_flat, (0, total - n))
    out_s = out_flat.reshape(rows_total, _LANES)
    gt_s = gt_flat.reshape(rows_total, _LANES)

    # ---- mu / logsig: pack both into a single small (2, R, 128) slab.
    # Padding positions line up between mu and logsig, so each padded element
    # contributes 1 + 0 - 0 - exp(0) = 0 to the KL sum.
    mu_flat = jnp.asarray(mu, jnp.float32).reshape(-1)
    ls_flat = jnp.asarray(logsig, jnp.float32).reshape(-1)
    n_lat = mu_flat.shape[0]
    r_kl = max(8, _round_up(pl.cdiv(n_lat, _LANES), 8))
    tot_kl = r_kl * _LANES
    if tot_kl != n_lat:
        mu_flat = jnp.pad(mu_flat, (0, tot_kl - n_lat))
        ls_flat = jnp.pad(ls_flat, (0, tot_kl - n_lat))
    kl_in = jnp.stack(
        [mu_flat.reshape(r_kl, _LANES), ls_flat.reshape(r_kl, _LANES)], axis=0
    )

    scalar_spec = pl.BlockSpec(
        (1, 1), lambda i: (0, 0), memory_space=pltpu.MemorySpace.SMEM
    )

    tot, rc, kl = pl.pallas_call(
        _elbo_kernel,
        grid=(nblk,),
        in_specs=[
            pl.BlockSpec((blk, _LANES), lambda i: (i, 0)),
            pl.BlockSpec((blk, _LANES), lambda i: (i, 0)),
            # Tiny, constant block index -> fetched once, stays VMEM-resident.
            pl.BlockSpec((2, r_kl, _LANES), lambda i: (0, 0, 0)),
        ],
        out_specs=(scalar_spec, scalar_spec, scalar_spec),
        out_shape=(
            jax.ShapeDtypeStruct((1, 1), jnp.float32),
            jax.ShapeDtypeStruct((1, 1), jnp.float32),
            jax.ShapeDtypeStruct((1, 1), jnp.float32),
        ),
        scratch_shapes=[
            pltpu.VMEM((blk, _LANES), jnp.float32),   # per-lane SSE accumulator
            pltpu.SMEM((1,), jnp.float32),            # KL scalar, computed once
        ],
        compiler_params=pltpu.CompilerParams(
            dimension_semantics=("arbitrary",),
        ),
    )(out_s, gt_s, kl_in)

    return tot[0, 0], rc[0, 0], kl[0, 0]


if __name__ == "__main__":
    key = jax.random.PRNGKey(0)
    k1, k2, k3, k4 = jax.random.split(key, 4)

    batch = 2
    latent_dim = 2
    # VAE-style shapes: small image reconstruction + 2-D latent stats.
    output = jax.random.uniform(k1, (batch, 4, 16, 16), jnp.float32)
    gt = jax.random.uniform(k2, (batch, 4, 16, 16), jnp.float32)
    mu = jax.random.normal(k3, (batch, latent_dim), jnp.float32)
    logsig = jax.random.normal(k4, (batch, latent_dim), jnp.float32) * 0.1

    total, rc, kl = jax.block_until_ready(elbo(mu, logsig, output, gt))

    # Reference check (plain JAX, mirrors the PyTorch math exactly).
    rc_ref = jnp.sum((output - gt) ** 2)
    kl_ref = -0.5 * jnp.sum(1.0 + logsig - mu**2 - jnp.exp(logsig))
    assert jnp.allclose(rc, rc_ref, rtol=1e-5, atol=1e-5), (rc, rc_ref)
    assert jnp.allclose(kl, kl_ref, rtol=1e-5, atol=1e-5), (kl, kl_ref)
    assert jnp.allclose(total, rc_ref + kl_ref, rtol=1e-5, atol=1e-5)

    print("KERNEL_OK")
</pallas_src>

<mosaic_0001>
module attributes {stable_mosaic.version = 11 : i64} {
  func.func @_elbo_kernel(%arg0: i32, %arg1: memref<16x128xf32, #tpu.memory_space<vmem>>, %arg2: memref<16x128xf32, #tpu.memory_space<vmem>>, %arg3: memref<2x8x128xf32, #tpu.memory_space<vmem>>, %arg4: memref<1x1xf32, #tpu.memory_space<smem>>, %arg5: memref<1x1xf32, #tpu.memory_space<smem>>, %arg6: memref<1x1xf32, #tpu.memory_space<smem>>, %arg7: memref<16x128xf32, #tpu.memory_space<vmem>>, %arg8: memref<1xf32, #tpu.memory_space<smem>>) attributes {dimension_semantics = [#tpu.dimension_semantics<arbitrary>], iteration_bounds = array<i64: 1>, scalar_prefetch = 0 : i64, scratch_operands = 2 : i64, tpu.core_type = #tpu.core_type<tc>, window_params = [{transform_indices = @transform_0, window_bounds = array<i64: 16, 128>}, {transform_indices = @transform_1, window_bounds = array<i64: 16, 128>}, {pipeline_mode = #tpu.pipeline_mode<synchronous>, transform_indices = @transform_2, window_bounds = array<i64: 2, 8, 128>}, {transform_indices = @transform_3, window_bounds = array<i64: 1, 1>}, {transform_indices = @transform_4, window_bounds = array<i64: 1, 1>}, {transform_indices = @transform_5, window_bounds = array<i64: 1, 1>}]} {
    %c0_i32 = arith.constant 0 : i32
    %0 = arith.cmpi eq, %arg0, %c0_i32 : i32
    %1 = arith.extui %0 : i1 to i32
    %c0_i32_0 = arith.constant 0 : i32
    %2 = arith.cmpi ne, %1, %c0_i32_0 : i32
    scf.if %2 {
      %cst = arith.constant 0.000000e+00 : f32
      %13 = vector.broadcast %cst : f32 to vector<16x128xf32>
      %c0_10 = arith.constant 0 : index
      %c0_11 = arith.constant 0 : index
      %14 = vector.load %arg7[%c0_10, %c0_11] : memref<16x128xf32, #tpu.memory_space<vmem>>, vector<16x128xf32>
      tpu.vector_store %arg7[%c0_10, %c0_11], %13 {strides = array<i32>} : memref<16x128xf32, #tpu.memory_space<vmem>>, vector<16x128xf32>,
      %c0_12 = arith.constant 0 : index
      %c0_13 = arith.constant 0 : index
      %c0_14 = arith.constant 0 : index
      %15 = vector.load %arg3[%c0_12, %c0_13, %c0_14] : memref<2x8x128xf32, #tpu.memory_space<vmem>>, vector<1x8x128xf32>
      %16 = vector.shape_cast %15 : vector<1x8x128xf32> to vector<8x128xf32>
      %c1 = arith.constant 1 : index
      %c0_15 = arith.constant 0 : index
      %c0_16 = arith.constant 0 : index
      %17 = vector.load %arg3[%c1, %c0_15, %c0_16] : memref<2x8x128xf32, #tpu.memory_space<vmem>>, vector<1x8x128xf32>
      %18 = vector.shape_cast %17 : vector<1x8x128xf32> to vector<8x128xf32>
      %cst_17 = arith.constant 1.000000e+00 : f32
      %19 = vector.broadcast %cst_17 : f32 to vector<8x128xf32>
      %20 = arith.addf %19, %18 : vector<8x128xf32>
      %21 = arith.mulf %16, %16 : vector<8x128xf32>
      %22 = arith.subf %20, %21 : vector<8x128xf32>
      %23 = math.exp %18 : vector<8x128xf32>
      %24 = arith.subf %22, %23 : vector<8x128xf32>
      %25 = vector.shape_cast %24 : vector<8x128xf32> to vector<1x8x128xf32>
      %cst_18 = arith.constant dense<0.000000e+00> : vector<1xf32>
      %26 = vector.multi_reduction <add>, %25, %cst_18 [1, 2] : vector<1x8x128xf32> to vector<1xf32>
      %27 = vector.shape_cast %26 : vector<1xf32> to vector<1x1x1xf32>
      %28 = vector.extract %27[0, 0, 0] : f32 from vector<1x1x1xf32>
      %cst_19 = arith.constant -5.000000e-01 : f32
      %29 = arith.mulf %cst_19, %28 : f32
      %c0_20 = arith.constant 0 : index
      %30 = memref.load %arg8[%c0_20] : memref<1xf32, #tpu.memory_space<smem>>
      memref.store %29, %arg8[%c0_20] : memref<1xf32, #tpu.memory_space<smem>>
    } else {
    }
    %c0 = arith.constant 0 : index
    %c0_1 = arith.constant 0 : index
    %3 = vector.load %arg1[%c0, %c0_1] : memref<16x128xf32, #tpu.memory_space<vmem>>, vector<16x128xf32>
    %c0_2 = arith.constant 0 : index
    %c0_3 = arith.constant 0 : index
    %4 = vector.load %arg2[%c0_2, %c0_3] : memref<16x128xf32, #tpu.memory_space<vmem>>, vector<16x128xf32>
    %5 = arith.subf %3, %4 : vector<16x128xf32>
    %c0_4 = arith.constant 0 : index
    %c0_5 = arith.constant 0 : index
    %6 = vector.load %arg7[%c0_4, %c0_5] : memref<16x128xf32, #tpu.memory_space<vmem>>, vector<16x128xf32>
    %7 = arith.mulf %5, %5 : vector<16x128xf32>
    %8 = arith.addf %6, %7 : vector<16x128xf32>
    %c0_6 = arith.constant 0 : index
    %c0_7 = arith.constant 0 : index
    %9 = vector.load %arg7[%c0_6, %c0_7] : memref<16x128xf32, #tpu.memory_space<vmem>>, vector<16x128xf32>
    tpu.vector_store %arg7[%c0_6, %c0_7], %8 {strides = array<i32>} : memref<16x128xf32, #tpu.memory_space<vmem>>, vector<16x128xf32>,
    %c0_i32_8 = arith.constant 0 : i32
    %10 = arith.cmpi eq, %arg0, %c0_i32_8 : i32
    %11 = arith.extui %10 : i1 to i32
    %c0_i32_9 = arith.constant 0 : i32
    %12 = arith.cmpi ne, %11, %c0_i32_9 : i32
    scf.if %12 {
      %c0_10 = arith.constant 0 : index
      %c0_11 = arith.constant 0 : index
      %13 = vector.load %arg7[%c0_10, %c0_11] : memref<16x128xf32, #tpu.memory_space<vmem>>, vector<16x128xf32>
      %14 = vector.shape_cast %13 : vector<16x128xf32> to vector<1x16x128xf32>
      %cst = arith.constant dense<0.000000e+00> : vector<1xf32>
      %15 = vector.multi_reduction <add>, %14, %cst [1, 2] : vector<1x16x128xf32> to vector<1xf32>
      %16 = vector.shape_cast %15 : vector<1xf32> to vector<1x1x1xf32>
      %17 = vector.extract %16[0, 0, 0] : f32 from vector<1x1x1xf32>
      %c0_12 = arith.constant 0 : index
      %18 = memref.load %arg8[%c0_12] : memref<1xf32, #tpu.memory_space<smem>>
      %c0_13 = arith.constant 0 : index
      %c0_14 = arith.constant 0 : index
      %19 = memref.load %arg5[%c0_13, %c0_14] : memref<1x1xf32, #tpu.memory_space<smem>>
      memref.store %17, %arg5[%c0_13, %c0_14] : memref<1x1xf32, #tpu.memory_space<smem>>
      %c0_15 = arith.constant 0 : index
      %c0_16 = arith.constant 0 : index
      %20 = memref.load %arg6[%c0_15, %c0_16] : memref<1x1xf32, #tpu.memory_space<smem>>
      memref.store %18, %arg6[%c0_15, %c0_16] : memref<1x1xf32, #tpu.memory_space<smem>>
      %21 = arith.addf %17, %18 : f32
      %c0_17 = arith.constant 0 : index
      %c0_18 = arith.constant 0 : index
      %22 = memref.load %arg4[%c0_17, %c0_18] : memref<1x1xf32, #tpu.memory_space<smem>>
      memref.store %21, %arg4[%c0_17, %c0_18] : memref<1x1xf32, #tpu.memory_space<smem>>
    } else {
    }
    return
  }
  func.func @transform_0(%arg0: i32) -> (i32, i32) {
    %c0_i32 = arith.constant 0 : i32
    %c0_i32_0 = arith.constant 0 : i32
    return %arg0, %c0_i32 : i32, i32
  }
  func.func @transform_1(%arg0: i32) -> (i32, i32) {
    %c0_i32 = arith.constant 0 : i32
    %c0_i32_0 = arith.constant 0 : i32
    return %arg0, %c0_i32 : i32, i32
  }
  func.func @transform_2(%arg0: i32) -> (i32, i32, i32) {
    %c0_i32 = arith.constant 0 : i32
    %c0_i32_0 = arith.constant 0 : i32
    %c0_i32_1 = arith.constant 0 : i32
    %c0_i32_2 = arith.constant 0 : i32
    return %c0_i32, %c0_i32_0, %c0_i32_1 : i32, i32, i32
  }
  func.func @transform_3(%arg0: i32) -> (i32, i32) {
    %c0_i32 = arith.constant 0 : i32
    %c0_i32_0 = arith.constant 0 : i32
    %c0_i32_1 = arith.constant 0 : i32
    return %c0_i32, %c0_i32_0 : i32, i32
  }
  func.func @transform_4(%arg0: i32) -> (i32, i32) {
    %c0_i32 = arith.constant 0 : i32
    %c0_i32_0 = arith.constant 0 : i32
    %c0_i32_1 = arith.constant 0 : i32
    return %c0_i32, %c0_i32_0 : i32, i32
  }
  func.func @transform_5(%arg0: i32) -> (i32, i32) {
    %c0_i32 = arith.constant 0 : i32
    %c0_i32_0 = arith.constant 0 : i32
    %c0_i32_1 = arith.constant 0 : i32
    return %c0_i32, %c0_i32_0 : i32, i32
  }
}

</mosaic_0001>

<bundles_post_ra>
// kernel: tpu_custom_call.1
= control target key start
LH: loop header
LB: loop body
LE: loop exit
PB: predicated region body
PF: predicated region fallthrough
CT: control target
= control target key end

     0   :  { %11 = vsyncpa [#allocation5], 0  ;;  %s360_s0 = inlined_call_operand.hbm [shape: f32[16,128], index: 0, kind: input, shape index: {}]   ;;  %s361_s1 = inlined_call_operand.hbm [shape: f32[16,128], index: 1, kind: input, shape index: {}]   ;;  %s362_s2 = inlined_call_operand.hbm [shape: f32[2,8,128], index: 2, kind: input, shape index: {}]   ;;  %s363_s3 = inlined_call_operand.hbm [shape: f32[1,1], index: 3, kind: output, shape index: {0}]   ;;  %s364_s4 = inlined_call_operand.hbm [shape: f32[1,1], index: 4, kind: output, shape index: {1}]   ;;  %s365_s5 = inlined_call_operand.hbm [shape: f32[1,1], index: 5, kind: output, shape index: {2}]  }
   0x1   :  { %12 = vsyncpa [#allocation8], 0 }
   0x2   :  { %13 = vsyncpa [#allocation6], 0 }
   0x3   :  { %14 = vsyncpa [#allocation12], 0  ;;  %s32_s20 = sshll.u32 %s361_s1, 4  ;;  %s304_s21 = smov [#allocation7]   ;;  %s33_s20 = int_to_ptr.hbm [resolvable:$true] %s32_s20 }
   0x4   :  { %s34_s22 = sshll.u32 %s304_s21, 4  ;;  %s19_s25 = sshll.u32 %s360_s0, 4  ;;  %s35_s22 = int_to_ptr.vmem [resolvable:$true] %s34_s22  ;;  %s20_s25 = int_to_ptr.hbm [resolvable:$true] %s19_s25 }
   0x5   :  { %s305_s26 = smov 128   ;;  %s306_s27 = smov 8  }
   0x6   :  { %40 = dma.hbm_to_vmem [thread:$0]  %s33_s20, 256, %s35_s22, [#allocation8], %s305_s26, %s305_s26, %s306_s27  }
   0x7   :  { %s307_s28 = smov [#allocation4]   ;;  %s45_s7 = sshll.u32 %s362_s2, 4  ;;  %s46_s7 = int_to_ptr.hbm [resolvable:$true] %s45_s7 }
   0x8   :  { %s21_s29 = sshll.u32 %s307_s28, 4  ;;  %s308_s1 = smov [#allocation9]   ;;  %s22_s29 = int_to_ptr.vmem [resolvable:$true] %s21_s29 }
   0x9   :  { %27 = dma.hbm_to_vmem [thread:$0]  %s20_s25, 256, %s22_s29, [#allocation5], %s305_s26, %s305_s26, %s306_s27  }
   0xa   :  { %s47_s8 = sshll.u32 %s308_s1, 4  ;;  %s48_s8 = int_to_ptr.vmem [resolvable:$true] %s47_s8 }
   0xb   :  { %53 = dma.hbm_to_vmem [thread:$0]  %s46_s7, 256, %s48_s8, [#allocation8], %s305_s26, %s305_s26, %s306_s27  }
   0xc   :  { %296 = dma.done.wait [#allocation5], 256  }
   0xd   :  { %297 = vsyncadd [#allocation5], 4294967040 }
   0xe   :  { %298 = dma.done.wait [#allocation8], 512  }
   0xf   :  { %299 = vsyncadd [#allocation8], 4294966784  ;;  %v72_v0 = vld [vmem:[#allocation9] sm:$0xff]  ;;  %v74_v1 = vld [vmem:[#allocation9 + $0x8] sm:$0xff]  ;;  %s144_s11 = sshll.u32 %s364_s4, 4  ;;  %s135_s14 = sshll.u32 %s363_s3, 4  ;;  %s145_s11 = int_to_ptr.hbm [resolvable:$true] %s144_s11  ;;  %s136_s14 = int_to_ptr.hbm [resolvable:$true] %s135_s14 }
  0x10   :  { %v78_v2 = vmul.f32 1.442695, %v74_v1  ;;  %v75_v3 = vadd.f32 1.0, %v74_v1  ;;  %v76_v4 = vmul.f32 %v72_v0, %v72_v0  ;;  %v93_v5 = vld [vmem:[#allocation4] sm:$0xff]  ;;  %v94_v6 = vld [vmem:[#allocation4 + $0x8] sm:$0xff]  ;;  %v95_v7 = vld [vmem:[#allocation7] sm:$0xff] }
  0x11   :  { %v96_v8 = vld [vmem:[#allocation7 + $0x8] sm:$0xff]  ;;  %v97_v10 = vsub.f32 %v93_v5, %v95_v7  ;;  %s153_s17 = sshll.u32 %s365_s5, 4  ;;  %s309_s20 = smov [#allocation11]   ;;  %s154_s17 = int_to_ptr.hbm [resolvable:$true] %s153_s17 }
  0x12   :  { %186 = vpow2.f32 %v78_v2  ;;  %v77_v9 = vsub.f32 %v75_v3, %v76_v4  ;;  %v98_v11 = vsub.f32 %v94_v6, %v96_v8  ;;  %s310_s21 = smov [#allocation10]   ;;  %s311_s4 = smov [#allocation13]  }
  0x13   :  { %v101_v14 = vmul.f32 %v97_v10, %v97_v10 }
  0x14   :  { %v102_v15 = vmul.f32 %v98_v11, %v98_v11 }
  0x16   :  { %v112_v16 = vadd.f32 %v102_v15, %v101_v14 }
  0x18   :  { %v187_v12 = vpop.eup %186 }
  0x19   :  { %v80_v13 = vsub.f32 %v77_v9, %v187_v12 }
  0x1b   :  { %81 = vadd.xlane.f32.xlu0 %v80_v13 }
  0x23   :  { %113 = vadd.xlane.f32.xlu0 %v112_v16 }
  0x8e   :  { %v82_v17 = vpop.xlane.xlu0 %81 }
  0x8f   :  { %v83_v18 = vrot.slane %v82_v17, 4 }
  0x91   :  { %v84_v19 = vadd.f32 %v83_v18, %v82_v17 }
  0x93   :  { %v85_v20 = vrot.slane %v84_v19, 2 }
  0x95   :  { %v86_v21 = vadd.f32 %v85_v20, %v84_v19 }
  0x96   :  { %v114_v22 = vpop.xlane.xlu0 %113 }
  0x97   :  { %v115_v23 = vrot.slane %v114_v22, 4  ;;  %v87_v24 = vrot.slane %v86_v21, 1 }
  0x99   :  { %v116_v25 = vadd.f32 %v115_v23, %v114_v22  ;;  %v88_v26 = vadd.f32 %v87_v24, %v86_v21 }
  0x9b   :  { %v117_v27 = vrot.slane %v116_v25, 2  ;;  %174 = vpush %v88_v26 }
  0x9d   :  { %v118_v28 = vadd.f32 %v117_v27, %v116_v25 }
  0x9f   :  { %v119_v29 = vrot.slane %v118_v28, 1 }
  0xa1   :  { %v120_v30 = vadd.f32 %v119_v29, %v118_v28 }
  0xa3   :  { %176 = vpush %v120_v30 }
  0xcc   :  { %s175_s0 = spop %174 }
  0xcd   :  { %s90_s2 = smul.f32 -0.5, %s175_s0 }
  0xcf   :  { %126 = sst [smem:[#allocation13]] %s90_s2 }
  0xd4   :  { %s177_s18 = spop %176 }
  0xd5   :  { %124 = sst [smem:[#allocation11]] %s177_s18 }
  0xd6   :  { %s127_s19 = sadd.f32 %s177_s18, %s90_s2 }
  0xd7   :  { %147 = dma.smem_to_hbm %s309_s20, 16, %s145_s11, [#allocation12]  }
  0xd8   :  { %129 = sst [smem:[#allocation10]] %s127_s19 }
  0xd9   :  { %138 = dma.smem_to_hbm %s310_s21, 16, %s136_s14, [#allocation6]  }
  0xda   :  { %156 = dma.smem_to_hbm %s311_s4, 16, %s154_s17, [#allocation12]  }
  0xdb   :  { %300 = dma.done.wait [#allocation6], 16  }
  0xdc   :  { %301 = vsyncadd [#allocation6], 4294967280 }
  0xdd   :  { %302 = dma.done.wait [#allocation12], 32  }
  0xde   :  { %303 = vsyncadd [#allocation12], 4294967264 }
  0xdf   :  { %169 = sfence }
  0xe0   :  { %170 = vsyncpa [#allocation5], 1 }
  0xe1   :  { %171 = vsyncpa [#allocation8], 1 }
  0xe2   :  { %172 = vsyncpa [#allocation6], 1 }
  0xe3   :  { %173 = vsyncpa [#allocation12], 1 }

</bundles_post_ra>
